<compile_context>
chip_gen: v7x
topology: tpu7x:2x2x1
jax: 0.10.0
libtpu: 0.0.40
codegen_flags: <defaults>
</compile_context>

<pallas_src>
import functools
import math

import jax
import jax.numpy as jnp
from jax.experimental import pallas as pl
from jax.experimental.pallas import tpu as pltpu


def _l_exp_gray_kernel(x_ref, ah_ref, aw_ref, mv_ref, out_ref, *, h_first, mxu_dtype):
    # Gray conversion with fused per-channel reads (no (2, hb, w) f32 temporary).
    # NOTE: channel 1 is intentionally used for both the 0.587 and 0.114 terms, exactly
    # as in the reference PyTorch code; the *256 ... /256 cancels exactly.
    gray = (x_ref[0, 0].astype(jnp.float32) * jnp.float32(0.299)
            + x_ref[0, 1].astype(jnp.float32) * jnp.float32(0.587 + 0.114))

    g = gray.astype(mxu_dtype)                       # (hb, w)
    ah = ah_ref[...]                                 # (hpb, hb)  resident constant
    aw = aw_ref[...]                                 # (w, wp)    resident constant

    # Average pooling as two MXU matmuls; order chosen at trace time so the larger
    # tile dimension is shrunk by patch_size first (fewer total MACs).
    if h_first:
        t = jnp.dot(ah, g, preferred_element_type=jnp.float32)           # (hpb, w)
        pooled = jnp.dot(t.astype(mxu_dtype), aw,
                         preferred_element_type=jnp.float32)              # (hpb, wp)
    else:
        t = jnp.dot(g, aw, preferred_element_type=jnp.float32)            # (hb, wp)
        pooled = jnp.dot(ah, t.astype(mxu_dtype),
                         preferred_element_type=jnp.float32)              # (hpb, wp)

    diff = pooled - mv_ref[0]
    partial = jnp.sum(diff * diff)                   # f32 scalar partial sum

    # One scalar per grid block, written into a lane-dense (1,1,1,128) slab; the tiny
    # cross-block reduction happens outside the kernel so both grid axes stay parallel.
    out_ref[...] = jnp.broadcast_to(partial, out_ref.shape)


def _vmem_capacity_bytes():
    """Physical VMEM on this chip (falls back to 128 MiB if the query is unavailable)."""
    try:
        cap = getattr(pltpu.get_tpu_info(), "vmem_capacity_bytes", None)
        if cap:
            return int(cap)
    except Exception:
        pass
    return 128 << 20


def _choose_h_block(h, w, patch_size, dtype_bytes, budget_bytes, min_blocks=1):
    """Rows per tile: an exact divisor of h that is a multiple of patch_size and of the
    sublane quantum; the largest one whose 2-channel tile fits the VMEM budget."""
    def tile_bytes(hb):
        return 2 * hb * w * dtype_bytes              # 2 channels per tile

    sublane = max(8, 32 // dtype_bytes)              # 8 f32, 16 bf16, 32 int8
    step = math.lcm(patch_size, sublane)

    # Exact-divisor candidates keep every tile on the aligned fast path; the full
    # height is always a legal (full-extent) block.
    divisors = [hb for hb in range(step, h, step) if h % hb == 0]
    divisors.append(h)

    eligible = [hb for hb in divisors if h // hb >= min_blocks] or divisors
    under = [hb for hb in eligible if tile_bytes(hb) <= budget_bytes]
    if under:
        return max(under)
    # Nothing fits the budget: take the smallest exact divisor instead of silently
    # falling back to the whole image (vmem_limit_bytes is set explicitly, so a
    # moderately over-budget tile still compiles).
    # TODO(synk): support a ragged/padded last tile (masked Ah rows) for awkward H
    # where even the smallest exact divisor is far over budget.
    return min(eligible)


def l_exp_gray(x, mean_val, patch_size, *, use_bf16_mxu=False):
    """Pallas implementation of L_exp_gray.forward(x, mean_val)."""
    b, c, h, w = x.shape
    assert c >= 2, "gray conversion needs at least 2 channels"
    assert h % patch_size == 0 and w % patch_size == 0
    hp, wp = h // patch_size, w // patch_size

    dtype_bytes = jnp.dtype(x.dtype).itemsize
    vmem_cap = _vmem_capacity_bytes()
    # Explicit scoped-VMEM limit with headroom below physical (v7x 64 MiB, else 128).
    vmem_limit = min(int(0.7 * vmem_cap), 64 << 20)
    # ~12 MiB input tiles (24 MiB double-buffered) amortize the fixed per-step cost
    # while leaving room for the resident pooling matrices and intermediates.
    budget_bytes = min(12 << 20, vmem_limit // 4)

    min_blocks = 2 if b == 1 else 1                  # keep both v7x TensorCores busy
    hb = _choose_h_block(h, w, patch_size, dtype_bytes, budget_bytes, min_blocks)
    n_hb = h // hb
    hpb = hb // patch_size

    mxu_dtype = jnp.bfloat16 if use_bf16_mxu else jnp.float32

    # Averaging matrices (resident constants): Ah_tile @ g_tile @ Aw == AvgPool2d(ps).
    row_idx = jnp.arange(hb) // patch_size
    ah = ((jnp.arange(hpb)[:, None] == row_idx[None, :]).astype(mxu_dtype)
          / jnp.asarray(patch_size, mxu_dtype))
    col_idx = jnp.arange(w) // patch_size
    aw = ((col_idx[:, None] == jnp.arange(wp)[None, :]).astype(mxu_dtype)
          / jnp.asarray(patch_size, mxu_dtype))

    mv = jnp.full((1,), mean_val, dtype=jnp.float32)  # 1-D SMEM scalar

    # Pool the larger tile dimension first (only worth it if hpb can fill the MXU M).
    h_first = (hb < w) and (hpb >= 128)

    kernel = functools.partial(_l_exp_gray_kernel, h_first=h_first, mxu_dtype=mxu_dtype)

    gray_flops = 3 * b * h * w
    if h_first:
        dot_flops = b * n_hb * (2 * hpb * hb * w + 2 * hpb * w * wp)
    else:
        dot_flops = b * n_hb * (2 * hb * w * wp + 2 * hpb * hb * wp)
    cost = pl.CostEstimate(
        flops=int(gray_flops + dot_flops + 3 * b * hp * wp),
        transcendentals=0,
        bytes_accessed=int(2 * b * h * w * dtype_bytes                     # 2/C channels read
                           + (hpb * hb + w * wp) * jnp.dtype(mxu_dtype).itemsize
                           + b * n_hb * 128 * 4 + 4))

    grid = (b, n_hb)
    out_shape = jax.ShapeDtypeStruct((b, n_hb, 1, 128), jnp.float32)

    def run(single_buffer_consts):
        const_kwargs = (dict(pipeline_mode=pl.Buffered(1))
                        if single_buffer_consts else {})
        in_specs = [
            # Only channels 0..1 ever leave HBM; tile over (batch, H).
            pl.BlockSpec((1, 2, hb, w), lambda i, j: (i, 0, j, 0)),
            # Pooling matrices: same block every step -> DMA'd once, stay resident;
            # single-buffered so no wasted second pipeline buffer for a constant.
            pl.BlockSpec((hpb, hb), lambda i, j: (0, 0), **const_kwargs),
            pl.BlockSpec((w, wp), lambda i, j: (0, 0), **const_kwargs),
            # mean_val scalar, untiled, in SMEM.
            pl.BlockSpec(memory_space=pltpu.MemorySpace.SMEM),
        ]
        return pl.pallas_call(
            kernel,
            grid=grid,
            out_shape=out_shape,
            in_specs=in_specs,
            out_specs=pl.BlockSpec((1, 1, 1, 128), lambda i, j: (i, j, 0, 0)),
            compiler_params=pltpu.CompilerParams(
                dimension_semantics=("parallel", "parallel"),
                vmem_limit_bytes=vmem_limit),
            cost_estimate=cost,
        )(x, ah, aw, mv)

    try:
        partials = run(True)
    except Exception:
        # Fallback for JAX builds where a 1-deep pipeline on an input is rejected.
        partials = run(False)

    # Tiny final reduction over the per-block partial sums (one scalar per block).
    return jnp.sum(partials[:, :, 0, 0]) / jnp.float32(b * hp * wp)


def _reference(x, mean_val, patch_size):
    gray = (x[:, 0] * 256 * 0.299 + x[:, 1] * 256 * 0.587 + x[:, 1] * 256 * 0.114) / 256
    b, h, w = gray.shape
    pooled = gray.reshape(b, h // patch_size, patch_size,
                          w // patch_size, patch_size).mean(axis=(2, 4))
    return jnp.mean((pooled - mean_val) ** 2)


if __name__ == "__main__":
    key = jax.random.PRNGKey(0)
    b, c, h, w = 2, 4, 16, 16
    patch_size = 4
    mean_val = 0.6

    x = jax.random.uniform(key, (b, c, h, w), dtype=jnp.float32)
    d_ref = _reference(x, mean_val, patch_size)

    # Default f32 MXU path (bit-accurate vs the reference).
    d = jax.block_until_ready(l_exp_gray(x, mean_val, patch_size))
    assert jnp.allclose(d, d_ref, rtol=1e-5, atol=1e-6), (d, d_ref)

    # bf16 MXU fast path (v6e/v7x), f32 accumulation -> small quantization drift.
    d_bf16 = jax.block_until_ready(
        l_exp_gray(x, mean_val, patch_size, use_bf16_mxu=True))
    assert jnp.allclose(d_bf16, d_ref, rtol=5e-2, atol=2e-3), (d_bf16, d_ref)

    print("KERNEL_OK")
</pallas_src>

<mosaic_0001>
module attributes {stable_mosaic.version = 11 : i64} {
  func.func @_l_exp_gray_kernel(%arg0: i32, %arg1: i32, %arg2: memref<1x2x16x16xf32, #tpu.memory_space<vmem>>, %arg3: memref<4x16xf32, #tpu.memory_space<vmem>>, %arg4: memref<16x4xf32, #tpu.memory_space<vmem>>, %arg5: memref<1xf32, #tpu.memory_space<smem>>, %arg6: memref<1x1x1x128xf32, #tpu.memory_space<vmem>>) attributes {dimension_semantics = [#tpu.dimension_semantics<parallel>, #tpu.dimension_semantics<parallel>], iteration_bounds = array<i64: 2, 1>, scalar_prefetch = 0 : i64, scratch_operands = 0 : i64, tpu.core_type = #tpu.core_type<tc>, window_params = [{transform_indices = @transform_0, window_bounds = array<i64: 1, 2, 16, 16>}, {pipeline_mode = #tpu.pipeline_mode<synchronous>, transform_indices = @transform_1, window_bounds = array<i64: 4, 16>}, {pipeline_mode = #tpu.pipeline_mode<synchronous>, transform_indices = @transform_2, window_bounds = array<i64: 16, 4>}, {transform_indices = @transform_3, window_bounds = array<i64: 1>}, {transform_indices = @transform_4, window_bounds = array<i64: 1, 1, 1, 128>}]} {
    %c0 = arith.constant 0 : index
    %c0_0 = arith.constant 0 : index
    %c0_1 = arith.constant 0 : index
    %c0_2 = arith.constant 0 : index
    %0 = vector.load %arg2[%c0, %c0_0, %c0_1, %c0_2] : memref<1x2x16x16xf32, #tpu.memory_space<vmem>>, vector<1x1x16x16xf32>
    %1 = vector.shape_cast %0 : vector<1x1x16x16xf32> to vector<16x16xf32>
    %cst = arith.constant 2.990000e-01 : f32
    %2 = vector.broadcast %cst : f32 to vector<16x16xf32>
    %3 = arith.mulf %1, %2 : vector<16x16xf32>
    %c0_3 = arith.constant 0 : index
    %c1 = arith.constant 1 : index
    %c0_4 = arith.constant 0 : index
    %c0_5 = arith.constant 0 : index
    %4 = vector.load %arg2[%c0_3, %c1, %c0_4, %c0_5] : memref<1x2x16x16xf32, #tpu.memory_space<vmem>>, vector<1x1x16x16xf32>
    %5 = vector.shape_cast %4 : vector<1x1x16x16xf32> to vector<16x16xf32>
    %cst_6 = arith.constant 7.010000e-01 : f32
    %6 = vector.broadcast %cst_6 : f32 to vector<16x16xf32>
    %7 = arith.mulf %5, %6 : vector<16x16xf32>
    %8 = arith.addf %3, %7 : vector<16x16xf32>
    %c0_7 = arith.constant 0 : index
    %c0_8 = arith.constant 0 : index
    %9 = vector.load %arg3[%c0_7, %c0_8] : memref<4x16xf32, #tpu.memory_space<vmem>>, vector<4x16xf32>
    %c0_9 = arith.constant 0 : index
    %c0_10 = arith.constant 0 : index
    %10 = vector.load %arg4[%c0_9, %c0_10] : memref<16x4xf32, #tpu.memory_space<vmem>>, vector<16x4xf32>
    %cst_11 = arith.constant dense<0.000000e+00> : vector<16x4xf32>
    %11 = tpu.matmul %8, %10, %cst_11 {dimension_numbers = #tpu.dot_dimension_numbers<[1], [0], [0], [1], [0, 0, 1, 1], [], []>} : vector<16x16xf32>, vector<16x4xf32>, vector<16x4xf32> -> vector<16x4xf32>
    %cst_12 = arith.constant dense<0.000000e+00> : vector<4x4xf32>
    %12 = tpu.matmul %9, %11, %cst_12 {dimension_numbers = #tpu.dot_dimension_numbers<[1], [0], [0], [1], [0, 0, 1, 1], [], []>} : vector<4x16xf32>, vector<16x4xf32>, vector<4x4xf32> -> vector<4x4xf32>
    %c0_13 = arith.constant 0 : index
    %13 = memref.load %arg5[%c0_13] : memref<1xf32, #tpu.memory_space<smem>>
    %14 = vector.broadcast %13 : f32 to vector<4x4xf32>
    %15 = arith.subf %12, %14 : vector<4x4xf32>
    %16 = arith.mulf %15, %15 : vector<4x4xf32>
    %17 = vector.shape_cast %16 : vector<4x4xf32> to vector<1x4x4xf32>
    %cst_14 = arith.constant dense<0.000000e+00> : vector<1xf32>
    %18 = vector.multi_reduction <add>, %17, %cst_14 [1, 2] : vector<1x4x4xf32> to vector<1xf32>
    %19 = vector.shape_cast %18 : vector<1xf32> to vector<1x1x1xf32>
    %20 = vector.extract %19[0, 0, 0] : f32 from vector<1x1x1xf32>
    %21 = vector.broadcast %20 : f32 to vector<1x1x1x128xf32>
    %c0_15 = arith.constant 0 : index
    %c0_16 = arith.constant 0 : index
    %c0_17 = arith.constant 0 : index
    %c0_18 = arith.constant 0 : index
    %22 = vector.load %arg6[%c0_15, %c0_16, %c0_17, %c0_18] : memref<1x1x1x128xf32, #tpu.memory_space<vmem>>, vector<1x1x1x128xf32>
    tpu.vector_store %arg6[%c0_15, %c0_16, %c0_17, %c0_18], %21 {strides = array<i32>} : memref<1x1x1x128xf32, #tpu.memory_space<vmem>>, vector<1x1x1x128xf32>,
    return
  }
  func.func @transform_0(%arg0: i32, %arg1: i32) -> (i32, i32, i32, i32) {
    %c0_i32 = arith.constant 0 : i32
    %c0_i32_0 = arith.constant 0 : i32
    %c0_i32_1 = arith.constant 0 : i32
    return %arg0, %c0_i32, %arg1, %c0_i32_0 : i32, i32, i32, i32
  }
  func.func @transform_1(%arg0: i32, %arg1: i32) -> (i32, i32) {
    %c0_i32 = arith.constant 0 : i32
    %c0_i32_0 = arith.constant 0 : i32
    %c0_i32_1 = arith.constant 0 : i32
    return %c0_i32, %c0_i32_0 : i32, i32
  }
  func.func @transform_2(%arg0: i32, %arg1: i32) -> (i32, i32) {
    %c0_i32 = arith.constant 0 : i32
    %c0_i32_0 = arith.constant 0 : i32
    %c0_i32_1 = arith.constant 0 : i32
    return %c0_i32, %c0_i32_0 : i32, i32
  }
  func.func @transform_3(%arg0: i32, %arg1: i32) -> i32 {
    %c0_i32 = arith.constant 0 : i32
    %c0_i32_0 = arith.constant 0 : i32
    return %c0_i32 : i32
  }
  func.func @transform_4(%arg0: i32, %arg1: i32) -> (i32, i32, i32, i32) {
    %c0_i32 = arith.constant 0 : i32
    %c0_i32_0 = arith.constant 0 : i32
    %c0_i32_1 = arith.constant 0 : i32
    return %arg0, %arg1, %c0_i32, %c0_i32_0 : i32, i32, i32, i32
  }
}

module attributes {stable_mosaic.version = 11 : i64} {
  func.func @_l_exp_gray_kernel(%arg0: i32, %arg1: i32, %arg2: memref<1x2x16x16xf32, #tpu.memory_space<vmem>>, %arg3: memref<4x16xf32, #tpu.memory_space<vmem>>, %arg4: memref<16x4xf32, #tpu.memory_space<vmem>>, %arg5: memref<1xf32, #tpu.memory_space<smem>>, %arg6: memref<1x1x1x128xf32, #tpu.memory_space<vmem>>) attributes {dimension_semantics = [#tpu.dimension_semantics<parallel>, #tpu.dimension_semantics<parallel>], iteration_bounds = array<i64: 2, 1>, scalar_prefetch = 0 : i64, scratch_operands = 0 : i64, tpu.core_type = #tpu.core_type<tc>, window_params = [{transform_indices = @transform_0, window_bounds = array<i64: 1, 2, 16, 16>}, {pipeline_mode = #tpu.pipeline_mode<synchronous>, transform_indices = @transform_1, window_bounds = array<i64: 4, 16>}, {pipeline_mode = #tpu.pipeline_mode<synchronous>, transform_indices = @transform_2, window_bounds = array<i64: 16, 4>}, {transform_indices = @transform_3, window_bounds = array<i64: 1>}, {transform_indices = @transform_4, window_bounds = array<i64: 1, 1, 1, 128>}]} {
    %c0 = arith.constant 0 : index
    %c0_0 = arith.constant 0 : index
    %c0_1 = arith.constant 0 : index
    %c0_2 = arith.constant 0 : index
    %0 = vector.load %arg2[%c0, %c0_0, %c0_1, %c0_2] : memref<1x2x16x16xf32, #tpu.memory_space<vmem>>, vector<1x1x16x16xf32>
    %1 = vector.shape_cast %0 : vector<1x1x16x16xf32> to vector<16x16xf32>
    %cst = arith.constant 2.990000e-01 : f32
    %2 = vector.broadcast %cst : f32 to vector<16x16xf32>
    %3 = arith.mulf %1, %2 : vector<16x16xf32>
    %c0_3 = arith.constant 0 : index
    %c1 = arith.constant 1 : index
    %c0_4 = arith.constant 0 : index
    %c0_5 = arith.constant 0 : index
    %4 = vector.load %arg2[%c0_3, %c1, %c0_4, %c0_5] : memref<1x2x16x16xf32, #tpu.memory_space<vmem>>, vector<1x1x16x16xf32>
    %5 = vector.shape_cast %4 : vector<1x1x16x16xf32> to vector<16x16xf32>
    %cst_6 = arith.constant 7.010000e-01 : f32
    %6 = vector.broadcast %cst_6 : f32 to vector<16x16xf32>
    %7 = arith.mulf %5, %6 : vector<16x16xf32>
    %8 = arith.addf %3, %7 : vector<16x16xf32>
    %c0_7 = arith.constant 0 : index
    %c0_8 = arith.constant 0 : index
    %9 = vector.load %arg3[%c0_7, %c0_8] : memref<4x16xf32, #tpu.memory_space<vmem>>, vector<4x16xf32>
    %c0_9 = arith.constant 0 : index
    %c0_10 = arith.constant 0 : index
    %10 = vector.load %arg4[%c0_9, %c0_10] : memref<16x4xf32, #tpu.memory_space<vmem>>, vector<16x4xf32>
    %cst_11 = arith.constant dense<0.000000e+00> : vector<16x4xf32>
    %11 = tpu.matmul %8, %10, %cst_11 {dimension_numbers = #tpu.dot_dimension_numbers<[1], [0], [0], [1], [0, 0, 1, 1], [], []>} : vector<16x16xf32>, vector<16x4xf32>, vector<16x4xf32> -> vector<16x4xf32>
    %cst_12 = arith.constant dense<0.000000e+00> : vector<4x4xf32>
    %12 = tpu.matmul %9, %11, %cst_12 {dimension_numbers = #tpu.dot_dimension_numbers<[1], [0], [0], [1], [0, 0, 1, 1], [], []>} : vector<4x16xf32>, vector<16x4xf32>, vector<4x4xf32> -> vector<4x4xf32>
    %c0_13 = arith.constant 0 : index
    %13 = memref.load %arg5[%c0_13] : memref<1xf32, #tpu.memory_space<smem>>
    %14 = vector.broadcast %13 : f32 to vector<4x4xf32>
    %15 = arith.subf %12, %14 : vector<4x4xf32>
    %16 = arith.mulf %15, %15 : vector<4x4xf32>
    %17 = vector.shape_cast %16 : vector<4x4xf32> to vector<1x4x4xf32>
    %cst_14 = arith.constant dense<0.000000e+00> : vector<1xf32>
    %18 = vector.multi_reduction <add>, %17, %cst_14 [1, 2] : vector<1x4x4xf32> to vector<1xf32>
    %19 = vector.shape_cast %18 : vector<1xf32> to vector<1x1x1xf32>
    %20 = vector.extract %19[0, 0, 0] : f32 from vector<1x1x1xf32>
    %21 = vector.broadcast %20 : f32 to vector<1x1x1x128xf32>
    %c0_15 = arith.constant 0 : index
    %c0_16 = arith.constant 0 : index
    %c0_17 = arith.constant 0 : index
    %c0_18 = arith.constant 0 : index
    %22 = vector.load %arg6[%c0_15, %c0_16, %c0_17, %c0_18] : memref<1x1x1x128xf32, #tpu.memory_space<vmem>>, vector<1x1x1x128xf32>
    tpu.vector_store %arg6[%c0_15, %c0_16, %c0_17, %c0_18], %21 {strides = array<i32>} : memref<1x1x1x128xf32, #tpu.memory_space<vmem>>, vector<1x1x1x128xf32>,
    return
  }
  func.func @transform_0(%arg0: i32, %arg1: i32) -> (i32, i32, i32, i32) {
    %c0_i32 = arith.constant 0 : i32
    %c0_i32_0 = arith.constant 0 : i32
    %c0_i32_1 = arith.constant 0 : i32
    return %arg0, %c0_i32, %arg1, %c0_i32_0 : i32, i32, i32, i32
  }
  func.func @transform_1(%arg0: i32, %arg1: i32) -> (i32, i32) {
    %c0_i32 = arith.constant 0 : i32
    %c0_i32_0 = arith.constant 0 : i32
    %c0_i32_1 = arith.constant 0 : i32
    return %c0_i32, %c0_i32_0 : i32, i32
  }
  func.func @transform_2(%arg0: i32, %arg1: i32) -> (i32, i32) {
    %c0_i32 = arith.constant 0 : i32
    %c0_i32_0 = arith.constant 0 : i32
    %c0_i32_1 = arith.constant 0 : i32
    return %c0_i32, %c0_i32_0 : i32, i32
  }
  func.func @transform_3(%arg0: i32, %arg1: i32) -> i32 {
    %c0_i32 = arith.constant 0 : i32
    %c0_i32_0 = arith.constant 0 : i32
    return %c0_i32 : i32
  }
  func.func @transform_4(%arg0: i32, %arg1: i32) -> (i32, i32, i32, i32) {
    %c0_i32 = arith.constant 0 : i32
    %c0_i32_0 = arith.constant 0 : i32
    %c0_i32_1 = arith.constant 0 : i32
    return %arg0, %arg1, %c0_i32, %c0_i32_0 : i32, i32, i32, i32
  }
}

</mosaic_0001>

<bundles_post_ra>
// kernel: tpu_custom_call.1
= control target key start
LH: loop header
LB: loop body
LE: loop exit
PB: predicated region body
PF: predicated region fallthrough
CT: control target
= control target key end

     0   :  { %s1172_s0 = inlined_call_operand.hbm [shape: f32[2,4,16,16], index: 0, kind: input, shape index: {}]   ;;  %s1173_s1 = inlined_call_operand.hbm [shape: f32[4,16], index: 1, kind: input, shape index: {}]   ;;  %s1174_s2 = inlined_call_operand.hbm [shape: f32[16,4], index: 2, kind: input, shape index: {}]   ;;  %s1175_s3 = inlined_call_operand.<no memory space> [shape: f32[1], index: 3, kind: input, shape index: {}]   ;;  %s1176_s4 = inlined_call_operand.hbm [shape: f32[2,1,1,128], index: 4, kind: output, shape index: {}]  }
   0x1   :  { %9 = sst [smem:[#allocation2]] %s1175_s3 }
   0x2   :  { %10 = vsyncpa [#allocation4], 0 }
   0x3   :  { %12 = vsyncpa [#allocation4 + $0x1], 0 }
   0x4   :  { %13 = vsyncpa [#allocation7], 0 }
   0x5   :  { %14 = vsyncpa [#allocation5], 0 }
   0x6   :  { %16 = vsyncpa [#allocation5 + $0x1], 0  ;;  %s910_s17 = smov 0   ;;  %s912_s18 = smov 0  }
   0x7   :  { %s914_s19 = smov 0   ;;  %s916_s20 = smov 0  }
   0x8   :  { %s918_s21 = smov 0   ;;  %s920_s22 = smov 0  }
   0x9 LB: > { %s559_s3 = sadd.s32 4294967295, %s871_s22   ;;  %s560_s23 = sadd.s32 4294967294, %s871_s22   ;;  %s871_s22 = sphi %s920_s22, %s22_s22   ;;  %s867_s21 = sphi %s918_s21, %s1204_s21   ;;  %s863_s20 = sphi %s916_s20, %s1203_s20   ;;  %s859_s19 = sphi %s914_s19, %s1202_s19   ;;  %s855_s18 = sphi %s912_s18, %s1201_s18   ;;  %s851_s17 = sphi %s910_s17, %s1200_s17  }
   0xa   : > { %p50_p0 = scmp.ne.s32.totalorder %s859_s19, %s855_s18  ;;  %p51_p1 = scmp.eq.s32.totalorder %s871_s22, 0 }
   0xb   : > { %p56_p2 = scmp.ne.s32.totalorder %s855_s18, %s851_s17  ;;  %p947_p3 = scmp.eq.s32.totalorder %s559_s3, 0 }
   0xc   : > { %p145_p4 = scmp.eq.s32.totalorder %s559_s3, 1  ;;  %p951_p5 = por %p51_p1, %p50_p0 }
   0xd   : > { %s1183_s24 = scalar_select %p947_p3, 1, 0 }
   0xe   : > { %p151_p6 = scmp.eq.s32.totalorder %s560_s23, 1  ;;  %p957_p7 = por %p947_p3, %p56_p2 }
   0xf   : > { %p961_p8 = por %p145_p4, %p50_p0  ;;  %p561_p10 = scmp.ge.s32.totalorder %s871_s22, 1 }
  0x10   : > { %s1185_s26 = scalar_select %p957_p7, 1, 0 }
  0x11   : > { %s1186_s27 = scalar_select %p961_p8, 1, 0 }
  0x12   : > { %p965_p9 = por %p151_p6, %p56_p2  ;;  %p158_p11 = scmp.lt.s32.totalorder %s871_s22, 3 }
  0x13   : > { %s873_s30 = smov [#allocation6]   ;;  %p640_p1 = scmp.lt.s32.totalorder %s871_s22, 2 }
  0x14   : > { %s1187_s28 = scalar_select %p965_p9, 1, 0 }
  0x15   : > { %p972_p13 = pnand %p561_p10, %p158_p11  ;;  %s171_s5 = sshll.u32 %s873_s30, 4  ;;  %s172_s5 = int_to_ptr.vmem [resolvable:$true] %s171_s5 }
  0x16   : > { %p981_p4 = pnand %p640_p1, %p951_p5  ;;  %s874_s7 = smov [#allocation8]  }
  0x17   : > { %s1188_s29 = scalar_select %p972_p13, 1, 0 }
  0x18   : > { %p623_p0 = pneg %p972_p13  ;;  %s181_s8 = sshll.u32 %s874_s7, 4  ;;  %s991_s8 = int_to_ptr.vmem [resolvable:$true] %s181_s8 }
  0x19   : > { %s1189_s6 = scalar_select %p981_p4, 1, 0 }
  0x1a   : > { %p987_p2 = pnand %p623_p0, %p947_p3  ;;  %s699_s12 = scalar_lea.hbm %s1173_s1, 64 }
  0x1b   : > { %p700_p5 = scmp.ne.s32.totalorder %s1173_s1, %s699_s12  ;;  %p706_p1 = scmp.lt.u32.totalorder %s699_s12, %s1173_s1 }
  0x1c   : > { %p701_p6 = pneg %p987_p2 }
  0x1e   : > { %p702_p10 = pnand %p701_p6, %p700_p5 }
  0x20   : > { %p703_p11 = pneg %p702_p10 }
  0x22   : > { %p708_p0 = pnand %p706_p1, %p703_p11 }
  0x24   : > { %711 = shalt.err (!%p708_p0)
}
  0x25   : > { %s712_s3 = scalar_lea.vmem %s172_s5, 64  ;;  %p720_p3 = scmp.lt.s32.totalorder %s172_s5, %s172_s5 }
  0x26   : > { %p713_p12 = scmp.ne.s32.totalorder %s172_s5, %s712_s3  ;;  %p721_p7 = scmp.lt.s32.totalorder %s712_s3, %s712_s3 }
  0x28   : > { %p715_p9 = pnand %p713_p12, %p701_p6  ;;  %p722_p13 = por %p721_p7, %p720_p3 }
  0x2a   : > { %p716_p8 = pneg %p715_p9 }
  0x2c   : > { %p723_p4 = pnand %p722_p13, %p716_p8 }
  0x2e   : > { %726 = shalt.err (!%p723_p4)
}
  0x2f   : > { %626 = dma.hbm_to_vmem [thread:$0]  (!%p987_p2), %s1173_s1, 64, %s172_s5, [#allocation7]  }
  0x30   : > { %s727_s10 = scalar_lea.hbm %s1174_s2, 256 }
  0x31   : > { %p728_p9 = scmp.ne.s32.totalorder %s1174_s2, %s727_s10  ;;  %p734_p8 = scmp.lt.u32.totalorder %s727_s10, %s1174_s2 }
  0x33   : > { %p730_p3 = pnand %p728_p9, %p701_p6 }
  0x35   : > { %p731_p7 = pneg %p730_p3 }
  0x37   : > { %p736_p12 = pnand %p734_p8, %p731_p7 }
  0x39   : > { %739 = shalt.err (!%p736_p12)
}
  0x3a   : > { %s740_s5 = scalar_lea.vmem %s991_s8, 256  ;;  %p748_p10 = scmp.lt.s32.totalorder %s991_s8, %s991_s8 }
  0x3b   : > { %p741_p13 = scmp.ne.s32.totalorder %s991_s8, %s740_s5  ;;  %p749_p11 = scmp.lt.s32.totalorder %s740_s5, %s740_s5 }
  0x3d   : > { %p743_p4 = pnand %p741_p13, %p701_p6  ;;  %p750_p1 = por %p749_p11, %p748_p10 }
  0x3f   : > { %p744_p5 = pneg %p743_p4 }
  0x41   : > { %p751_p0 = pnand %p750_p1, %p744_p5 }
  0x43   : > { %754 = shalt.err (!%p751_p0)
}
  0x44   : > { %s875_s15 = smov 128   ;;  %s876_s16 = smov 8  }
  0x45   : > { %629 = dma.hbm_to_vmem [thread:$0]  (!%p987_p2), %s1174_s2, 256, %s991_s8, [#allocation7], %s875_s15, %s875_s15, %s876_s16  }
  0x46   : > { %s198_s25 = sand.u32 1, %s859_s19   ;;  %s34_s30 = sadd.s32 1, %s867_s21 }
  0x47   : > { %s565_s7 = sshll.u32 %s198_s25, 5  ;;  %p36_p6 = scmp.ge.s32.totalorder %s34_s30, 2 }
  0x48   : > { %s580_s10 = sshll.u32 %s867_s21, 10  ;;  %s202_s11 = scalar_lea.vmem [#allocation3], %s565_s7 }
  0x49   : > { %s211_s12 = sshll.u32 %s202_s11, 4  ;;  %s1206_s30 = smov (%p36_p6, %s34_s30), 0  ;;  %s1053_s12 = int_to_ptr.vmem [resolvable:$true] %s211_s12 }
  0x4a   : > { %s1051_s14 = scalar_lea.hbm %s1172_s0, %s580_s10  ;;  %s38_s5 = ssub.s32 %s867_s21, %s1206_s30 }
  0x4b   : > { %p1058_p2 = scmp.eq.s32.totalorder %s38_s5, 0  ;;  %s1062_s23 = scalar_lea.sflag [#allocation4], %s198_s25 }
  0x4c   : > { %s755_s7 = scalar_lea.hbm %s1051_s14, 512  ;;  %p1192_p3 = scmp.ne.s32.totalorder %s1189_s6, 0 }
  0x4d   : > { %p756_p9 = scmp.ne.s32.totalorder %s1051_s14, %s755_s7  ;;  %s760_s13 = scalar_lea.hbm %s1172_s0, 2048 }
  0x4e   : > { %p757_p7 = pneg %p1192_p3  ;;  %p761_p13 = scmp.lt.u32.totalorder %s1051_s14, %s1172_s0 }
  0x4f   : > { %p762_p4 = scmp.lt.u32.totalorder %s760_s13, %s755_s7  ;;  %p764_p10 = scmp.lt.u32.totalorder %s755_s7, %s1051_s14 }
  0x50   : > { %p758_p8 = pnand %p757_p7, %p756_p9 }
  0x51   : > { %p763_p5 = por %p762_p4, %p761_p13 }
  0x52   : > { %p759_p12 = pneg %p758_p8 }
  0x53   : > { %p765_p11 = por %p764_p10, %p763_p5 }
  0x55   : > { %p766_p1 = pnand %p765_p11, %p759_p12 }
  0x57   : > { %769 = shalt.err (!%p766_p1)
}
  0x58   : > { %s770_s25 = scalar_lea.vmem %s1053_s12, 512  ;;  %s877_s5 = smov [#allocation3]  }
  0x59   : > { %p771_p0 = scmp.ne.s32.totalorder %s1053_s12, %s770_s25  ;;  %s775_s10 = sshll.u32 %s877_s5, 4  ;;  %s776_s10 = int_to_ptr.vmem [resolvable:$false] %s775_s10 }
  0x5a   : > { %s777_s8 = scalar_lea.vmem %s776_s10, 1024  ;;  %p778_p8 = scmp.lt.s32.totalorder %s1053_s12, %s776_s10 }
  0x5b   : > { %p773_p6 = pnand %p771_p0, %p757_p7  ;;  %p779_p13 = scmp.lt.s32.totalorder %s777_s8, %s770_s25 }
  0x5d   : > { %p774_p9 = pneg %p773_p6  ;;  %p780_p4 = por %p779_p13, %p778_p8 }
  0x5f   : > { %p781_p5 = pnand %p780_p4, %p774_p9 }
  0x61   : > { %784 = shalt.err (!%p781_p5)
}
  0x62   : > { %633 = dma.hbm_to_vmem [thread:$0]  (!%p1192_p3), %s1051_s14, 512, %s1053_s12, %s1062_s23, %s875_s15, %s875_s15, %s876_s16  }
  0x63   : > { %s1193_s7 = sadd.s32 1, %s859_s19  ;;  %p1194_p7 = scmp.ne.s32.totalorder %s1188_s29, 0 }
  0x64   : > { %s1098_s11 = scalar_select %p1058_p2, %s859_s19, %s1193_s7  }
  0x65   : > { %223 = sbr.rel (%p1194_p7) target bundleno = 773 (0x305), region = 36  ;;  %s1103_s6 = sand.u32 (!%p1194_p7), 1, %s855_s18  }
  0x66   : > { %s569_s13 = sshll.u32 (!%p1194_p7), %s1103_s6, 5  ;;  %s226_s9 = scalar_lea.sflag (!%p1194_p7), [#allocation4], %s1103_s6 }
  0x67   : > { %s229_s25 = scalar_lea.vmem (!%p1194_p7), [#allocation3], %s569_s13  ;;  %p1195_p12 = scmp.ne.s32.totalorder (!%p1194_p7), %s1185_s26, 0 }
  0x6c   : > { %838 = dma.done.wait (%p1195_p12), %s226_s9, 512  }
  0x6d   : > { %840 = vsyncadd (%p1195_p12), %s226_s9, 4294966784  ;;  %p1196_p2 = scmp.ne.s32.totalorder %s1183_s24, 0 }
  0x6f   : > { %842 = dma.done.wait (%p1196_p2), [#allocation7], 320  }
  0x70   : > { %844 = vsyncadd (%p1196_p2), [#allocation7], 4294966976  ;;  %v274_v0 = vld [vmem:[#allocation8] sm:$0xff]  ;;  %v275_v1 = vld [vmem:[#allocation8 + $0x8] sm:$0xff]  ;;  %vm276_vm0 = vcmask 130048   ;;  %v878_v13 = vmov 0.0|0.0  }
  0x71   : > { %v262_v2 = vld [vmem:[%s229_s25] sm:$0xff]  ;;  %v602_v3 = vpack.c.bf16 %v275_v1, %v274_v0  ;;  %v572_v5 = vld [vmem:[%s229_s25 + $0x10] sm:$0xff]  ;;  %v263_v6 = vld [vmem:[%s229_s25 + $0x8] sm:$0xff]  ;;  %606 = vmatprep.subr.bf16.mxu1 %v878_v13  ;;  %vm879_vm1 = vmmov 0   ;;  %v880_v14 = vmov 0.0   ;;  %s431_s24 = sld [smem:[#allocation2]] }
  0x72   : > { %v264_v4 = vmul.f32 0.299, %v262_v2  ;;  %v573_v7 = vld [vmem:[%s229_s25 + $0x18] sm:$0xff]  ;;  %v269_v8 = vmul.f32 0.701, %v572_v5  ;;  %599 = vmatprep.mubr.msk.f32.mxu1 %vm879_vm1, %v880_v14  ;;  %vm435_vm2 = vcmask 27648  }
  0x73   : > { %v265_v9 = vmul.f32 0.299, %v263_v6  ;;  %v270_v10 = vmul.f32 0.701, %v573_v7  ;;  %603 = vmatprep.subr.bf16.mxu0 %v602_v3  ;;  %v273_v18 = vld [vmem:[#allocation6] sm:$0xf] }
  0x74   : > { %605 = vmatpush3.bf16.msra.mxu0 %v602_v3  ;;  %v271_v11 = vadd.f32 %v269_v8, %v264_v4  ;;  %s260_s26 = scalar_lea.vmem [#allocation9], %s1103_s6  ;;  %s577_s15 = sshll.u32 %s863_s20, 4 }
  0x75   : > { %v272_v12 = vadd.f32 %v270_v10, %v265_v9  ;;  %s462_s29 = sshll.u32 %s260_s26, 4  ;;  %s1125_s3 = scalar_lea.hbm %s1176_s4, %s577_s15  ;;  %s1120_s29 = int_to_ptr.vmem [resolvable:$true] %s462_s29 }
  0x76   : > { %592 = vmatprep.mubr.msk.f32.mxu0 %vm276_vm0, %v271_v11  ;;  %s449_s23 = scalar_lea.sflag [#allocation5], %s1103_s6  ;;  %s785_s5 = scalar_lea.vmem %s1120_s29, 16 }
  0x77   : > { %593 = vmatmul.mubr.msk.f32.vlgmr.msra.gmra.mrb[0].mxu0 %vm276_vm0, %v272_v12  ;;  %v432_v19 = vstv %s431_s24  ;;  %p786_p3 = scmp.ne.s32.totalorder %s1120_s29, %s785_s5  ;;  %p1197_p10 = scmp.ne.s32.totalorder %s1186_s27, 0 }
  0x78   : > { %s881_s20 = smov [#allocation9]  }
  0x79   : > { %p787_p11 = pnand %p786_p3, %p1197_p10  ;;  %s789_s10 = sshll.u32 %s881_s20, 4  ;;  %s790_s10 = int_to_ptr.vmem [resolvable:$false] %s789_s10 }
  0x7a   : > { %s791_s8 = scalar_lea.vmem %s790_s10, 32  ;;  %p792_p0 = scmp.lt.s32.totalorder %s1120_s29, %s790_s10 }
  0x7b   : > { %p788_p1 = pneg %p787_p11  ;;  %p793_p6 = scmp.lt.s32.totalorder %s791_s8, %s785_s5 }
  0x7d   : > { %p794_p9 = por %p793_p6, %p792_p0 }
  0x7f   : > { %p795_p8 = pnand %p794_p9, %p788_p1 }
 0x14a   : > { %v594_v15 = vpop.f32.mrb[0].mxu0 }
 0x14b   : > { %v349_v16 = vpop.f32.mrb[1].mxu0 }
 0x14c   : > { %v607_v17 = vpack.c.bf16 %v594_v15, %v349_v16 }
 0x14e   : > { %608 = vmatpush3.bf16.msra.mxu1 %v607_v17 }
 0x151   : > { %600 = vmatmul.mubr.msk.f32.vlgmr.msra.gmra.mrb[0].mxu1 %vm276_vm0, %v273_v18 }
 0x224   : > { %v427_v20 = vpop.f32.mrb[0].mxu1 }
 0x225   : > { %v433_v21 = vsub.f32 %v427_v20, %v432_v19  ;;  %v601_v22 = vpop.f32.mrb[1].mxu1 }
 0x227   : > { %v434_v23 = vmul.f32 %v433_v21, %v433_v21 }
 0x229   : > { %v436_v24 = vsel %vm435_vm2, %v434_v23, 0.0 }
 0x22a   : > { %437 = vadd.xlane.f32.xlu0 %v436_v24 }
 0x2b7   : > { %v438_v25 = vpop.xlane.xlu0 %437 }
 0x2b8   : > { %v439_v26 = vrot.slane %v438_v25, 4 }
 0x2ba   : > { %v440_v27 = vadd.f32 %v439_v26, %v438_v25 }
 0x2bc   : > { %v441_v28 = vrot.slane %v440_v27, 2 }
 0x2be   : > { %v442_v29 = vadd.f32 %v441_v28, %v440_v27 }
 0x2c0   : > { %v443_v30 = vrot.slane %v442_v29, 1 }
 0x2c2   : > { %v444_v31 = vadd.f32 %v443_v30, %v442_v29 }
 0x2c4   : > { %609 = vpush %v444_v31 }
 0x2f5   : > { %s610_s16 = spop %609 }
 0x2f6   : > { %v446_v32 = vstv %s610_s16 }
 0x2f7   : > { %447 = vst [vmem:[%s260_s26] sm:$0x1] %v446_v32 }
 0x2f8   : > { %798 = shalt.err (!%p795_p8)
}
 0x2f9   : > { %s799_s7 = scalar_lea.hbm %s1125_s3, 16  ;;  %s803_s9 = scalar_lea.hbm %s1176_s4, 32 }
 0x2fa   : > { %p800_p13 = scmp.ne.s32.totalorder %s1125_s3, %s799_s7  ;;  %p804_p7 = scmp.lt.u32.totalorder %s1125_s3, %s1176_s4 }
 0x2fb   : > { %p805_p12 = scmp.lt.u32.totalorder %s803_s9, %s799_s7  ;;  %p807_p3 = scmp.lt.u32.totalorder %s799_s7, %s1125_s3 }
 0x2fc   : > { %p801_p4 = pnand %p800_p13, %p1197_p10 }
 0x2fd   : > { %p806_p2 = por %p805_p12, %p804_p7 }
 0x2fe   : > { %p802_p5 = pneg %p801_p4 }
 0x2ff   : > { %p808_p11 = por %p807_p3, %p806_p2 }
 0x301   : > { %p809_p1 = pnand %p808_p11, %p802_p5 }
 0x303   : > { %812 = shalt.err (!%p809_p1)
}
 0x304   : > { %621 = dma.vmem_to_hbm [thread:$0]  (%p1197_p10), %s1120_s29, 16, %s1125_s3, %s449_s23  }
 0x305 PF: > { %s474_s26 = sand.u32 1, %s851_s17   ;;  %p1198_p0 = scmp.ne.s32.totalorder %s1187_s28, 0 }
 0x306   : > { %p1199_p6 = scmp.ge.s32.totalorder %s871_s22, 2  ;;  %s475_s15 = scalar_lea.sflag [#allocation5], %s474_s26 }
 0x308   : > { %p635_p9 = pnand %p1199_p6, %p1198_p0 }
 0x30a   : > { %846 = dma.done.wait (!%p635_p9), %s475_s15, 16  }
 0x30b   : > { %848 = vsyncadd (!%p635_p9), %s475_s15, 4294967280  ;;  %s22_s22 = sadd.s32 1, %s871_s22   ;;  %s1200_s17 = smov %s855_s18 }
 0x30c   : > { %p19_p8 = scmp.ge.s32.totalorder %s22_s22, 4   ;;  %s1201_s18 = smov %s859_s19 }
 0x30d   : > { %s1202_s19 = smov %s1098_s11  ;;  %s1203_s20 = smov %s867_s21 }
 0x30e   : > { %s1204_s21 = smov %s1206_s30  ;;  %21 = sbr.rel (!%p19_p8) target bundleno = 9 (0x9), region = 90 }
 0x315   :  { %479 = vsyncpa [#allocation4], 1 }
 0x316   :  { %481 = vsyncpa [#allocation4 + $0x1], 1 }
 0x317   :  { %482 = vsyncpa [#allocation7], 1 }
 0x318   :  { %483 = vsyncpa [#allocation5], 1 }
 0x319   :  { %485 = vsyncpa [#allocation5 + $0x1], 1 }

// kernel: tpu_custom_call.1
= control target key start
LH: loop header
LB: loop body
LE: loop exit
PB: predicated region body
PF: predicated region fallthrough
CT: control target
= control target key end

     0   :  { %s1172_s0 = inlined_call_operand.hbm [shape: f32[2,4,16,16], index: 0, kind: input, shape index: {}]   ;;  %s1173_s1 = inlined_call_operand.hbm [shape: f32[4,16], index: 1, kind: input, shape index: {}]   ;;  %s1174_s2 = inlined_call_operand.hbm [shape: f32[16,4], index: 2, kind: input, shape index: {}]   ;;  %s1175_s3 = inlined_call_operand.<no memory space> [shape: f32[1], index: 3, kind: input, shape index: {}]   ;;  %s1176_s4 = inlined_call_operand.hbm [shape: f32[2,1,1,128], index: 4, kind: output, shape index: {}]  }
   0x1   :  { %9 = sst [smem:[#allocation2]] %s1175_s3 }
   0x2   :  { %10 = vsyncpa [#allocation4], 0 }
   0x3   :  { %12 = vsyncpa [#allocation4 + $0x1], 0 }
   0x4   :  { %13 = vsyncpa [#allocation7], 0 }
   0x5   :  { %14 = vsyncpa [#allocation5], 0 }
   0x6   :  { %16 = vsyncpa [#allocation5 + $0x1], 0  ;;  %s910_s17 = smov 0   ;;  %s912_s18 = smov 0  }
   0x7   :  { %s914_s19 = smov 0   ;;  %s916_s20 = smov 0  }
   0x8   :  { %s918_s21 = smov 0   ;;  %s920_s22 = smov 0  }
   0x9 LB: > { %s559_s3 = sadd.s32 4294967295, %s871_s22   ;;  %s560_s23 = sadd.s32 4294967294, %s871_s22   ;;  %s871_s22 = sphi %s920_s22, %s22_s22   ;;  %s867_s21 = sphi %s918_s21, %s1204_s21   ;;  %s863_s20 = sphi %s916_s20, %s1203_s20   ;;  %s859_s19 = sphi %s914_s19, %s1202_s19   ;;  %s855_s18 = sphi %s912_s18, %s1201_s18   ;;  %s851_s17 = sphi %s910_s17, %s1200_s17  }
   0xa   : > { %p50_p0 = scmp.ne.s32.totalorder %s859_s19, %s855_s18  ;;  %p51_p1 = scmp.eq.s32.totalorder %s871_s22, 0 }
   0xb   : > { %p56_p2 = scmp.ne.s32.totalorder %s855_s18, %s851_s17  ;;  %p947_p3 = scmp.eq.s32.totalorder %s559_s3, 0 }
   0xc   : > { %p145_p4 = scmp.eq.s32.totalorder %s559_s3, 1  ;;  %p951_p5 = por %p51_p1, %p50_p0 }
   0xd   : > { %s1183_s24 = scalar_select %p947_p3, 1, 0 }
   0xe   : > { %p151_p6 = scmp.eq.s32.totalorder %s560_s23, 1  ;;  %p957_p7 = por %p947_p3, %p56_p2 }
   0xf   : > { %p961_p8 = por %p145_p4, %p50_p0  ;;  %p561_p10 = scmp.ge.s32.totalorder %s871_s22, 1 }
  0x10   : > { %s1185_s26 = scalar_select %p957_p7, 1, 0 }
  0x11   : > { %s1186_s27 = scalar_select %p961_p8, 1, 0 }
  0x12   : > { %p965_p9 = por %p151_p6, %p56_p2  ;;  %p158_p11 = scmp.lt.s32.totalorder %s871_s22, 3 }
  0x13   : > { %s873_s30 = smov [#allocation6]   ;;  %p640_p1 = scmp.lt.s32.totalorder %s871_s22, 2 }
  0x14   : > { %s1187_s28 = scalar_select %p965_p9, 1, 0 }
  0x15   : > { %p972_p13 = pnand %p561_p10, %p158_p11  ;;  %s171_s5 = sshll.u32 %s873_s30, 4  ;;  %s172_s5 = int_to_ptr.vmem [resolvable:$true] %s171_s5 }
  0x16   : > { %p981_p4 = pnand %p640_p1, %p951_p5  ;;  %s874_s7 = smov [#allocation8]  }
  0x17   : > { %s1188_s29 = scalar_select %p972_p13, 1, 0 }
  0x18   : > { %p623_p0 = pneg %p972_p13  ;;  %s181_s8 = sshll.u32 %s874_s7, 4  ;;  %s991_s8 = int_to_ptr.vmem [resolvable:$true] %s181_s8 }
  0x19   : > { %s1189_s6 = scalar_select %p981_p4, 1, 0 }
  0x1a   : > { %p987_p2 = pnand %p623_p0, %p947_p3  ;;  %s699_s12 = scalar_lea.hbm %s1173_s1, 64 }
  0x1b   : > { %p700_p5 = scmp.ne.s32.totalorder %s1173_s1, %s699_s12  ;;  %p706_p1 = scmp.lt.u32.totalorder %s699_s12, %s1173_s1 }
  0x1c   : > { %p701_p6 = pneg %p987_p2 }
  0x1e   : > { %p702_p10 = pnand %p701_p6, %p700_p5 }
  0x20   : > { %p703_p11 = pneg %p702_p10 }
  0x22   : > { %p708_p0 = pnand %p706_p1, %p703_p11 }
  0x24   : > { %711 = shalt.err (!%p708_p0)
}
  0x25   : > { %s712_s3 = scalar_lea.vmem %s172_s5, 64  ;;  %p720_p3 = scmp.lt.s32.totalorder %s172_s5, %s172_s5 }
  0x26   : > { %p713_p12 = scmp.ne.s32.totalorder %s172_s5, %s712_s3  ;;  %p721_p7 = scmp.lt.s32.totalorder %s712_s3, %s712_s3 }
  0x28   : > { %p715_p9 = pnand %p713_p12, %p701_p6  ;;  %p722_p13 = por %p721_p7, %p720_p3 }
  0x2a   : > { %p716_p8 = pneg %p715_p9 }
  0x2c   : > { %p723_p4 = pnand %p722_p13, %p716_p8 }
  0x2e   : > { %726 = shalt.err (!%p723_p4)
}
  0x2f   : > { %626 = dma.hbm_to_vmem [thread:$0]  (!%p987_p2), %s1173_s1, 64, %s172_s5, [#allocation7]  }
  0x30   : > { %s727_s10 = scalar_lea.hbm %s1174_s2, 256 }
  0x31   : > { %p728_p9 = scmp.ne.s32.totalorder %s1174_s2, %s727_s10  ;;  %p734_p8 = scmp.lt.u32.totalorder %s727_s10, %s1174_s2 }
  0x33   : > { %p730_p3 = pnand %p728_p9, %p701_p6 }
  0x35   : > { %p731_p7 = pneg %p730_p3 }
  0x37   : > { %p736_p12 = pnand %p734_p8, %p731_p7 }
  0x39   : > { %739 = shalt.err (!%p736_p12)
}
  0x3a   : > { %s740_s5 = scalar_lea.vmem %s991_s8, 256  ;;  %p748_p10 = scmp.lt.s32.totalorder %s991_s8, %s991_s8 }
  0x3b   : > { %p741_p13 = scmp.ne.s32.totalorder %s991_s8, %s740_s5  ;;  %p749_p11 = scmp.lt.s32.totalorder %s740_s5, %s740_s5 }
  0x3d   : > { %p743_p4 = pnand %p741_p13, %p701_p6  ;;  %p750_p1 = por %p749_p11, %p748_p10 }
  0x3f   : > { %p744_p5 = pneg %p743_p4 }
  0x41   : > { %p751_p0 = pnand %p750_p1, %p744_p5 }
  0x43   : > { %754 = shalt.err (!%p751_p0)
}
  0x44   : > { %s875_s15 = smov 128   ;;  %s876_s16 = smov 8  }
  0x45   : > { %629 = dma.hbm_to_vmem [thread:$0]  (!%p987_p2), %s1174_s2, 256, %s991_s8, [#allocation7], %s875_s15, %s875_s15, %s876_s16  }
  0x46   : > { %s198_s25 = sand.u32 1, %s859_s19   ;;  %s34_s30 = sadd.s32 1, %s867_s21 }
  0x47   : > { %s565_s7 = sshll.u32 %s198_s25, 5  ;;  %p36_p6 = scmp.ge.s32.totalorder %s34_s30, 2 }
  0x48   : > { %s580_s10 = sshll.u32 %s867_s21, 10  ;;  %s202_s11 = scalar_lea.vmem [#allocation3], %s565_s7 }
  0x49   : > { %s211_s12 = sshll.u32 %s202_s11, 4  ;;  %s1206_s30 = smov (%p36_p6, %s34_s30), 0  ;;  %s1053_s12 = int_to_ptr.vmem [resolvable:$true] %s211_s12 }
  0x4a   : > { %s1051_s14 = scalar_lea.hbm %s1172_s0, %s580_s10  ;;  %s38_s5 = ssub.s32 %s867_s21, %s1206_s30 }
  0x4b   : > { %p1058_p2 = scmp.eq.s32.totalorder %s38_s5, 0  ;;  %s1062_s23 = scalar_lea.sflag [#allocation4], %s198_s25 }
  0x4c   : > { %s755_s7 = scalar_lea.hbm %s1051_s14, 512  ;;  %p1192_p3 = scmp.ne.s32.totalorder %s1189_s6, 0 }
  0x4d   : > { %p756_p9 = scmp.ne.s32.totalorder %s1051_s14, %s755_s7  ;;  %s760_s13 = scalar_lea.hbm %s1172_s0, 2048 }
  0x4e   : > { %p757_p7 = pneg %p1192_p3  ;;  %p761_p13 = scmp.lt.u32.totalorder %s1051_s14, %s1172_s0 }
  0x4f   : > { %p762_p4 = scmp.lt.u32.totalorder %s760_s13, %s755_s7  ;;  %p764_p10 = scmp.lt.u32.totalorder %s755_s7, %s1051_s14 }
  0x50   : > { %p758_p8 = pnand %p757_p7, %p756_p9 }
  0x51   : > { %p763_p5 = por %p762_p4, %p761_p13 }
  0x52   : > { %p759_p12 = pneg %p758_p8 }
  0x53   : > { %p765_p11 = por %p764_p10, %p763_p5 }
  0x55   : > { %p766_p1 = pnand %p765_p11, %p759_p12 }
  0x57   : > { %769 = shalt.err (!%p766_p1)
}
  0x58   : > { %s770_s25 = scalar_lea.vmem %s1053_s12, 512  ;;  %s877_s5 = smov [#allocation3]  }
  0x59   : > { %p771_p0 = scmp.ne.s32.totalorder %s1053_s12, %s770_s25  ;;  %s775_s10 = sshll.u32 %s877_s5, 4  ;;  %s776_s10 = int_to_ptr.vmem [resolvable:$false] %s775_s10 }
  0x5a   : > { %s777_s8 = scalar_lea.vmem %s776_s10, 1024  ;;  %p778_p8 = scmp.lt.s32.totalorder %s1053_s12, %s776_s10 }
  0x5b   : > { %p773_p6 = pnand %p771_p0, %p757_p7  ;;  %p779_p13 = scmp.lt.s32.totalorder %s777_s8, %s770_s25 }
  0x5d   : > { %p774_p9 = pneg %p773_p6  ;;  %p780_p4 = por %p779_p13, %p778_p8 }
  0x5f   : > { %p781_p5 = pnand %p780_p4, %p774_p9 }
  0x61   : > { %784 = shalt.err (!%p781_p5)
}
  0x62   : > { %633 = dma.hbm_to_vmem [thread:$0]  (!%p1192_p3), %s1051_s14, 512, %s1053_s12, %s1062_s23, %s875_s15, %s875_s15, %s876_s16  }
  0x63   : > { %s1193_s7 = sadd.s32 1, %s859_s19  ;;  %p1194_p7 = scmp.ne.s32.totalorder %s1188_s29, 0 }
  0x64   : > { %s1098_s11 = scalar_select %p1058_p2, %s859_s19, %s1193_s7  }
  0x65   : > { %223 = sbr.rel (%p1194_p7) target bundleno = 773 (0x305), region = 36  ;;  %s1103_s6 = sand.u32 (!%p1194_p7), 1, %s855_s18  }
  0x66   : > { %s569_s13 = sshll.u32 (!%p1194_p7), %s1103_s6, 5  ;;  %s226_s9 = scalar_lea.sflag (!%p1194_p7), [#allocation4], %s1103_s6 }
  0x67   : > { %s229_s25 = scalar_lea.vmem (!%p1194_p7), [#allocation3], %s569_s13  ;;  %p1195_p12 = scmp.ne.s32.totalorder (!%p1194_p7), %s1185_s26, 0 }
  0x6c   : > { %838 = dma.done.wait (%p1195_p12), %s226_s9, 512  }
  0x6d   : > { %840 = vsyncadd (%p1195_p12), %s226_s9, 4294966784  ;;  %p1196_p2 = scmp.ne.s32.totalorder %s1183_s24, 0 }
  0x6f   : > { %842 = dma.done.wait (%p1196_p2), [#allocation7], 320  }
  0x70   : > { %844 = vsyncadd (%p1196_p2), [#allocation7], 4294966976  ;;  %v274_v0 = vld [vmem:[#allocation8] sm:$0xff]  ;;  %v275_v1 = vld [vmem:[#allocation8 + $0x8] sm:$0xff]  ;;  %vm276_vm0 = vcmask 130048   ;;  %v878_v13 = vmov 0.0|0.0  }
  0x71   : > { %v262_v2 = vld [vmem:[%s229_s25] sm:$0xff]  ;;  %v602_v3 = vpack.c.bf16 %v275_v1, %v274_v0  ;;  %v572_v5 = vld [vmem:[%s229_s25 + $0x10] sm:$0xff]  ;;  %v263_v6 = vld [vmem:[%s229_s25 + $0x8] sm:$0xff]  ;;  %606 = vmatprep.subr.bf16.mxu1 %v878_v13  ;;  %vm879_vm1 = vmmov 0   ;;  %v880_v14 = vmov 0.0   ;;  %s431_s24 = sld [smem:[#allocation2]] }
  0x72   : > { %v264_v4 = vmul.f32 0.299, %v262_v2  ;;  %v573_v7 = vld [vmem:[%s229_s25 + $0x18] sm:$0xff]  ;;  %v269_v8 = vmul.f32 0.701, %v572_v5  ;;  %599 = vmatprep.mubr.msk.f32.mxu1 %vm879_vm1, %v880_v14  ;;  %vm435_vm2 = vcmask 27648  }
  0x73   : > { %v265_v9 = vmul.f32 0.299, %v263_v6  ;;  %v270_v10 = vmul.f32 0.701, %v573_v7  ;;  %603 = vmatprep.subr.bf16.mxu0 %v602_v3  ;;  %v273_v18 = vld [vmem:[#allocation6] sm:$0xf] }
  0x74   : > { %605 = vmatpush3.bf16.msra.mxu0 %v602_v3  ;;  %v271_v11 = vadd.f32 %v269_v8, %v264_v4  ;;  %s260_s26 = scalar_lea.vmem [#allocation9], %s1103_s6  ;;  %s577_s15 = sshll.u32 %s863_s20, 4 }
  0x75   : > { %v272_v12 = vadd.f32 %v270_v10, %v265_v9  ;;  %s462_s29 = sshll.u32 %s260_s26, 4  ;;  %s1125_s3 = scalar_lea.hbm %s1176_s4, %s577_s15  ;;  %s1120_s29 = int_to_ptr.vmem [resolvable:$true] %s462_s29 }
  0x76   : > { %592 = vmatprep.mubr.msk.f32.mxu0 %vm276_vm0, %v271_v11  ;;  %s449_s23 = scalar_lea.sflag [#allocation5], %s1103_s6  ;;  %s785_s5 = scalar_lea.vmem %s1120_s29, 16 }
  0x77   : > { %593 = vmatmul.mubr.msk.f32.vlgmr.msra.gmra.mrb[0].mxu0 %vm276_vm0, %v272_v12  ;;  %v432_v19 = vstv %s431_s24  ;;  %p786_p3 = scmp.ne.s32.totalorder %s1120_s29, %s785_s5  ;;  %p1197_p10 = scmp.ne.s32.totalorder %s1186_s27, 0 }
  0x78   : > { %s881_s20 = smov [#allocation9]  }
  0x79   : > { %p787_p11 = pnand %p786_p3, %p1197_p10  ;;  %s789_s10 = sshll.u32 %s881_s20, 4  ;;  %s790_s10 = int_to_ptr.vmem [resolvable:$false] %s789_s10 }
  0x7a   : > { %s791_s8 = scalar_lea.vmem %s790_s10, 32  ;;  %p792_p0 = scmp.lt.s32.totalorder %s1120_s29, %s790_s10 }
  0x7b   : > { %p788_p1 = pneg %p787_p11  ;;  %p793_p6 = scmp.lt.s32.totalorder %s791_s8, %s785_s5 }
  0x7d   : > { %p794_p9 = por %p793_p6, %p792_p0 }
  0x7f   : > { %p795_p8 = pnand %p794_p9, %p788_p1 }
 0x14a   : > { %v594_v15 = vpop.f32.mrb[0].mxu0 }
 0x14b   : > { %v349_v16 = vpop.f32.mrb[1].mxu0 }
 0x14c   : > { %v607_v17 = vpack.c.bf16 %v594_v15, %v349_v16 }
 0x14e   : > { %608 = vmatpush3.bf16.msra.mxu1 %v607_v17 }
 0x151   : > { %600 = vmatmul.mubr.msk.f32.vlgmr.msra.gmra.mrb[0].mxu1 %vm276_vm0, %v273_v18 }
 0x224   : > { %v427_v20 = vpop.f32.mrb[0].mxu1 }
 0x225   : > { %v433_v21 = vsub.f32 %v427_v20, %v432_v19  ;;  %v601_v22 = vpop.f32.mrb[1].mxu1 }
 0x227   : > { %v434_v23 = vmul.f32 %v433_v21, %v433_v21 }
 0x229   : > { %v436_v24 = vsel %vm435_vm2, %v434_v23, 0.0 }
 0x22a   : > { %437 = vadd.xlane.f32.xlu0 %v436_v24 }
 0x2b7   : > { %v438_v25 = vpop.xlane.xlu0 %437 }
 0x2b8   : > { %v439_v26 = vrot.slane %v438_v25, 4 }
 0x2ba   : > { %v440_v27 = vadd.f32 %v439_v26, %v438_v25 }
 0x2bc   : > { %v441_v28 = vrot.slane %v440_v27, 2 }
 0x2be   : > { %v442_v29 = vadd.f32 %v441_v28, %v440_v27 }
 0x2c0   : > { %v443_v30 = vrot.slane %v442_v29, 1 }
 0x2c2   : > { %v444_v31 = vadd.f32 %v443_v30, %v442_v29 }
 0x2c4   : > { %609 = vpush %v444_v31 }
 0x2f5   : > { %s610_s16 = spop %609 }
 0x2f6   : > { %v446_v32 = vstv %s610_s16 }
 0x2f7   : > { %447 = vst [vmem:[%s260_s26] sm:$0x1] %v446_v32 }
 0x2f8   : > { %798 = shalt.err (!%p795_p8)
}
 0x2f9   : > { %s799_s7 = scalar_lea.hbm %s1125_s3, 16  ;;  %s803_s9 = scalar_lea.hbm %s1176_s4, 32 }
 0x2fa   : > { %p800_p13 = scmp.ne.s32.totalorder %s1125_s3, %s799_s7  ;;  %p804_p7 = scmp.lt.u32.totalorder %s1125_s3, %s1176_s4 }
 0x2fb   : > { %p805_p12 = scmp.lt.u32.totalorder %s803_s9, %s799_s7  ;;  %p807_p3 = scmp.lt.u32.totalorder %s799_s7, %s1125_s3 }
 0x2fc   : > { %p801_p4 = pnand %p800_p13, %p1197_p10 }
 0x2fd   : > { %p806_p2 = por %p805_p12, %p804_p7 }
 0x2fe   : > { %p802_p5 = pneg %p801_p4 }
 0x2ff   : > { %p808_p11 = por %p807_p3, %p806_p2 }
 0x301   : > { %p809_p1 = pnand %p808_p11, %p802_p5 }
 0x303   : > { %812 = shalt.err (!%p809_p1)
}
 0x304   : > { %621 = dma.vmem_to_hbm [thread:$0]  (%p1197_p10), %s1120_s29, 16, %s1125_s3, %s449_s23  }
 0x305 PF: > { %s474_s26 = sand.u32 1, %s851_s17   ;;  %p1198_p0 = scmp.ne.s32.totalorder %s1187_s28, 0 }
 0x306   : > { %p1199_p6 = scmp.ge.s32.totalorder %s871_s22, 2  ;;  %s475_s15 = scalar_lea.sflag [#allocation5], %s474_s26 }
 0x308   : > { %p635_p9 = pnand %p1199_p6, %p1198_p0 }
 0x30a   : > { %846 = dma.done.wait (!%p635_p9), %s475_s15, 16  }
 0x30b   : > { %848 = vsyncadd (!%p635_p9), %s475_s15, 4294967280  ;;  %s22_s22 = sadd.s32 1, %s871_s22   ;;  %s1200_s17 = smov %s855_s18 }
 0x30c   : > { %p19_p8 = scmp.ge.s32.totalorder %s22_s22, 4   ;;  %s1201_s18 = smov %s859_s19 }
 0x30d   : > { %s1202_s19 = smov %s1098_s11  ;;  %s1203_s20 = smov %s867_s21 }
 0x30e   : > { %s1204_s21 = smov %s1206_s30  ;;  %21 = sbr.rel (!%p19_p8) target bundleno = 9 (0x9), region = 90 }
 0x315   :  { %479 = vsyncpa [#allocation4], 1 }
 0x316   :  { %481 = vsyncpa [#allocation4 + $0x1], 1 }
 0x317   :  { %482 = vsyncpa [#allocation7], 1 }
 0x318   :  { %483 = vsyncpa [#allocation5], 1 }
 0x319   :  { %485 = vsyncpa [#allocation5 + $0x1], 1 }

</bundles_post_ra>
